<compile_context>
chip_gen: v7x
topology: tpu7x:2x2x1
jax: 0.10.0
libtpu: 0.0.40
codegen_flags: <defaults>
</compile_context>

<pallas_src>
import functools
import math

import jax
import jax.numpy as jnp
from jax.experimental import pallas as pl
from jax.experimental.pallas import tpu as pltpu


# ----------------------------------------------------------------------------
# Pallas kernel: apply the user-supplied func to one VMEM block.
# ----------------------------------------------------------------------------
def _lambda_kernel(x_ref, o_ref, *, func, args, kwargs):
    o_ref[...] = func(x_ref[...], *args, **kwargs).astype(o_ref.dtype)


def _sublane_multiple(dtype):
    """Minimum packed sublane multiple for a dtype (8 f32, 16 bf16, 32 int8)."""
    itemsize = jnp.dtype(dtype).itemsize
    return max(8, 32 // max(itemsize, 1))


class Lambda:
    """Pallas-backed equivalent of the PyTorch Lambda module.

    forward(X) == func(X, *args, **kwargs), executed inside a Pallas TPU
    kernel over large lane-dense VMEM blocks. `func` must be elementwise
    (shape-preserving, broadcasting only against scalars / its extra args).
    """

    _LANE = 128
    # Candidate lane-dense widths; the largest one that divides the (padded)
    # element count (and, preferably, still leaves >= one packed vreg worth of
    # rows) is used as the slab's last dim.
    _LANE_WIDTHS = (8192, 4096, 2048, 1024, 512, 256, 128)
    # Target combined (input + output) bytes per grid block. Double-buffered
    # this stays ~8 MiB -> safe under every generation's scoped-VMEM default.
    _TARGET_BLOCK_BYTES = 4 * 1024 * 1024

    def __init__(self, func, *args, **kwargs):
        self.func = func
        self.args = args
        self.kwargs = kwargs
        self._call_cache = {}  # (rows, lane_width, block_rows, in_dt, out_dt) -> callable

    def __call__(self, X):
        return self.forward(X)

    # -- helpers -------------------------------------------------------------
    def _probe_out_dtype(self, in_dtype):
        probe = jax.eval_shape(
            lambda v: self.func(v, *self.args, **self.kwargs),
            jax.ShapeDtypeStruct((8, self._LANE), in_dtype),
        )
        assert probe.shape == (8, self._LANE), (
            "Lambda Pallas kernel only supports elementwise / shape-preserving "
            f"funcs; got output shape {probe.shape} for input (8, {self._LANE})."
        )
        return probe.dtype

    def _pick_lane_width(self, padded, mult):
        # Prefer the largest candidate that both divides the padded size and
        # leaves at least `mult` rows (full packed vregs, dense sublanes).
        for cand in self._LANE_WIDTHS:
            if padded % cand == 0 and padded // cand >= mult:
                return cand
        # Otherwise just the largest divisor (lane-dense rows, few sublanes).
        for cand in self._LANE_WIDTHS:
            if padded % cand == 0:
                return cand
        return self._LANE

    def _pick_block_rows(self, rows, lane_width, mult, in_item, out_item):
        row_bytes = lane_width * (in_item + out_item)
        target_rows = max(1, self._TARGET_BLOCK_BYTES // row_bytes)
        block_rows = max(mult, (target_rows // mult) * mult)
        if block_rows >= rows:
            if rows >= 2 * mult:
                # Keep >= 2 grid steps so both v7x TensorCores get work.
                half = -(-rows // 2)
                block_rows = -(-half // mult) * mult
            else:
                block_rows = rows  # full row dim (always a legal block shape)
        return block_rows

    def _get_pallas_call(self, rows, lane_width, block_rows, in_dtype, out_dtype):
        key = (rows, lane_width, block_rows, jnp.dtype(in_dtype).str,
               jnp.dtype(out_dtype).str)
        fn = self._call_cache.get(key)
        if fn is not None:
            return fn
        kernel = functools.partial(
            _lambda_kernel, func=self.func, args=self.args, kwargs=self.kwargs
        )
        fn = pl.pallas_call(
            kernel,
            out_shape=jax.ShapeDtypeStruct((rows, lane_width), out_dtype),
            grid_spec=pl.GridSpec(
                grid=(pl.cdiv(rows, block_rows),),
                in_specs=[pl.BlockSpec((block_rows, lane_width), lambda i: (i, 0))],
                out_specs=pl.BlockSpec((block_rows, lane_width), lambda i: (i, 0)),
            ),
            compiler_params=pltpu.CompilerParams(
                dimension_semantics=("parallel",)
            ),
        )
        self._call_cache[key] = fn
        return fn

    # -- forward ---------------------------------------------------------------
    def forward(self, X):
        orig_shape = X.shape
        total = int(math.prod(orig_shape)) if len(orig_shape) else 1
        in_dtype = X.dtype

        if total == 0:
            # Empty tensor: nothing to compute; preserve dtype semantics.
            out_dtype = self._probe_out_dtype(in_dtype)
            return jnp.zeros(orig_shape, dtype=out_dtype)

        out_dtype = self._probe_out_dtype(in_dtype)

        in_item = jnp.dtype(in_dtype).itemsize
        out_item = jnp.dtype(out_dtype).itemsize
        mult = max(_sublane_multiple(in_dtype), _sublane_multiple(out_dtype))

        # Minimal padding: only up to lane (128) alignment, and only if needed.
        pad = (-total) % self._LANE
        padded = total + pad

        lane_width = self._pick_lane_width(padded, mult)
        rows = padded // lane_width
        block_rows = self._pick_block_rows(rows, lane_width, mult, in_item, out_item)

        if pad:
            x_flat = jnp.reshape(X, (total,))
            x_flat = jnp.concatenate(
                [x_flat, jnp.zeros((pad,), dtype=in_dtype)], axis=0
            )
            x2d = jnp.reshape(x_flat, (rows, lane_width))
        else:
            x2d = jnp.reshape(X, (rows, lane_width))

        call = self._get_pallas_call(rows, lane_width, block_rows, in_dtype, out_dtype)
        y2d = call(x2d)

        if pad:
            y_flat = jnp.reshape(y2d, (padded,))[:total]
            return jnp.reshape(y_flat, orig_shape)
        return jnp.reshape(y2d, orig_shape)


# ----------------------------------------------------------------------------
# Demo / self-test
# ----------------------------------------------------------------------------
if __name__ == "__main__":
    key = jax.random.PRNGKey(0)
    k1, k2, k3 = jax.random.split(key, 3)

    # --- Test 1: pointwise func with extra positional / keyword args -------
    def scaled_shifted_relu(x, scale, shift=0.0):
        return jnp.maximum(x, 0.0) * scale + shift

    module = Lambda(scaled_shifted_relu, 2.0, shift=0.5)
    x = jax.random.normal(k1, (2, 4, 16, 16), dtype=jnp.float32)  # NCHW
    y = jax.block_until_ready(module(x))
    y_ref = scaled_shifted_relu(x, 2.0, shift=0.5)
    assert y.shape == x.shape and y.dtype == y_ref.dtype
    assert jnp.allclose(y, y_ref, atol=1e-6, rtol=1e-6)

    # Second call at the same shape exercises the compiled-call cache.
    y_again = jax.block_until_ready(module(x))
    assert jnp.allclose(y_again, y_ref, atol=1e-6, rtol=1e-6)

    # --- Test 2: dtype-changing func, non-128-aligned size (pad path) ------
    cast_scale = Lambda(lambda v, s: v.astype(jnp.float32) * s, 3.0)
    xb = jax.random.normal(k2, (3, 5, 7, 11), dtype=jnp.bfloat16)
    yb = jax.block_until_ready(cast_scale(xb))
    yb_ref = xb.astype(jnp.float32) * 3.0
    assert yb.shape == xb.shape and yb.dtype == jnp.float32
    assert jnp.allclose(yb, yb_ref, atol=1e-6, rtol=1e-6)

    # --- Test 3: larger input exercising a multi-step grid -----------------
    gelu_mod = Lambda(jax.nn.gelu)
    xc = jax.random.normal(k3, (128, 4, 16, 16), dtype=jnp.float32)
    yc = jax.block_until_ready(gelu_mod(xc))
    yc_ref = jax.nn.gelu(xc)
    assert yc.shape == xc.shape
    assert jnp.allclose(yc, yc_ref, atol=1e-5, rtol=1e-5)

    print("KERNEL_OK")
</pallas_src>

<mosaic_0001>
module attributes {stable_mosaic.version = 11 : i64} {
  func.func @_lambda_kernel(%arg0: i32, %arg1: memref<8x256xf32, #tpu.memory_space<vmem>>, %arg2: memref<8x256xf32, #tpu.memory_space<vmem>>) attributes {dimension_semantics = [#tpu.dimension_semantics<parallel>], iteration_bounds = array<i64: 1>, scalar_prefetch = 0 : i64, scratch_operands = 0 : i64, tpu.core_type = #tpu.core_type<tc>, window_params = [{transform_indices = @transform_0, window_bounds = array<i64: 8, 256>}, {transform_indices = @transform_1, window_bounds = array<i64: 8, 256>}]} {
    %c0 = arith.constant 0 : index
    %c0_0 = arith.constant 0 : index
    %0 = vector.load %arg1[%c0, %c0_0] : memref<8x256xf32, #tpu.memory_space<vmem>>, vector<8x256xf32>
    %cst = arith.constant 0.000000e+00 : f32
    %1 = vector.broadcast %cst : f32 to vector<8x256xf32>
    %2 = arith.maximumf %0, %1 : vector<8x256xf32>
    %cst_1 = arith.constant 2.000000e+00 : f32
    %3 = vector.broadcast %cst_1 : f32 to vector<8x256xf32>
    %4 = arith.mulf %2, %3 : vector<8x256xf32>
    %cst_2 = arith.constant 5.000000e-01 : f32
    %5 = vector.broadcast %cst_2 : f32 to vector<8x256xf32>
    %6 = arith.addf %4, %5 : vector<8x256xf32>
    %c0_3 = arith.constant 0 : index
    %c0_4 = arith.constant 0 : index
    %7 = vector.load %arg2[%c0_3, %c0_4] : memref<8x256xf32, #tpu.memory_space<vmem>>, vector<8x256xf32>
    tpu.vector_store %arg2[%c0_3, %c0_4], %6 {strides = array<i32>} : memref<8x256xf32, #tpu.memory_space<vmem>>, vector<8x256xf32>,
    return
  }
  func.func @transform_0(%arg0: i32) -> (i32, i32) {
    %c0_i32 = arith.constant 0 : i32
    %c0_i32_0 = arith.constant 0 : i32
    return %arg0, %c0_i32 : i32, i32
  }
  func.func @transform_1(%arg0: i32) -> (i32, i32) {
    %c0_i32 = arith.constant 0 : i32
    %c0_i32_0 = arith.constant 0 : i32
    return %arg0, %c0_i32 : i32, i32
  }
}

</mosaic_0001>

<bundles_post_ra>
// kernel: tpu_custom_call.1
= control target key start
LH: loop header
LB: loop body
LE: loop exit
PB: predicated region body
PF: predicated region fallthrough
CT: control target
= control target key end

     0   :  { %6 = vsyncpa [#allocation3], 0  ;;  %s132_s0 = inlined_call_operand.hbm [shape: f32[8,256], index: 0, kind: input, shape index: {}]   ;;  %s133_s1 = inlined_call_operand.hbm [shape: f32[8,256], index: 1, kind: output, shape index: {}]  }
   0x1   :  { %7 = vsyncpa [#allocation4], 0  ;;  %s96_s6 = smov [#allocation2]   ;;  %s48_s10 = scalar_lea.hbm %s132_s0, 256 }
   0x2   :  { %s14_s7 = sshll.u32 %s96_s6, 4  ;;  %p49_p0 = scmp.ne.s32.totalorder %s132_s0, %s48_s10  ;;  %s15_s7 = int_to_ptr.vmem [resolvable:$true] %s14_s7 }
   0x3   :  { %p52_p1 = scmp.lt.u32.totalorder %s48_s10, %s132_s0 }
   0x5   :  { %p54_p2 = pnand %p52_p1, %p49_p0 }
   0x7   :  { %57 = shalt.err (!%p54_p2)
}
   0x8   :  { %s58_s15 = scalar_lea.vmem %s15_s7, 256  ;;  %p63_p4 = scmp.lt.s32.totalorder %s15_s7, %s15_s7 }
   0x9   :  { %p59_p3 = scmp.ne.s32.totalorder %s15_s7, %s58_s15  ;;  %p64_p5 = scmp.lt.s32.totalorder %s58_s15, %s58_s15 }
   0xb   :  { %p65_p6 = por %p64_p5, %p63_p4 }
   0xd   :  { %p66_p7 = pnand %p65_p6, %p59_p3 }
   0xf   :  { %69 = shalt.err (!%p66_p7)
}
  0x10   :  { %17 = dma.hbm_to_vmem [thread:$0]  %s132_s0, 256, %s15_s7, [#allocation3]  }
  0x11   :  { %92 = dma.done.wait [#allocation3], 256  }
  0x12   :  { %93 = vsyncadd [#allocation3], 4294967040  ;;  %v21_v0 = vld [vmem:[#allocation2] sm:$0xff]  ;;  %v22_v1 = vld [vmem:[#allocation2 + $0x8] sm:$0xff]  ;;  %s97_s18 = smov [#allocation5]  }
  0x13   :  { %v23_v2 = vmax.f32 %v21_v0, 0.0  ;;  %v24_v3 = vmax.f32 %v22_v1, 0.0  ;;  %s37_s19 = sshll.u32 %s97_s18, 4  ;;  %s38_s19 = int_to_ptr.vmem [resolvable:$true] %s37_s19 }
  0x14   :  { %s70_s20 = scalar_lea.vmem %s38_s19, 256  ;;  %p75_p9 = scmp.lt.s32.totalorder %s38_s19, %s38_s19 }
  0x15   :  { %v25_v4 = vmul.f32 2.0, %v23_v2  ;;  %v26_v5 = vmul.f32 2.0, %v24_v3  ;;  %p71_p8 = scmp.ne.s32.totalorder %s38_s19, %s70_s20  ;;  %p76_p10 = scmp.lt.s32.totalorder %s70_s20, %s70_s20 }
  0x17   :  { %v27_v6 = vadd.f32 0.5, %v25_v4  ;;  %v28_v7 = vadd.f32 0.5, %v26_v5  ;;  %p77_p11 = por %p76_p10, %p75_p9 }
  0x19   :  { %29 = vst [vmem:[#allocation5] sm:$0xff] %v27_v6  ;;  %30 = vst [vmem:[#allocation5 + $0x8] sm:$0xff] %v28_v7  ;;  %p78_p12 = pnand %p77_p11, %p71_p8 }
  0x1b   :  { %81 = shalt.err (!%p78_p12)
}
  0x1c   :  { %s82_s22 = scalar_lea.hbm %s133_s1, 256 }
  0x1d   :  { %p83_p13 = scmp.ne.s32.totalorder %s133_s1, %s82_s22  ;;  %p86_p0 = scmp.lt.u32.totalorder %s82_s22, %s133_s1 }
  0x1f   :  { %p88_p1 = pnand %p86_p0, %p83_p13 }
  0x21   :  { %91 = shalt.err (!%p88_p1)
}
  0x22   :  { %40 = dma.vmem_to_hbm [thread:$0]  %s38_s19, 256, %s133_s1, [#allocation4]  }
  0x23   :  { %94 = dma.done.wait [#allocation4], 256  }
  0x24   :  { %95 = vsyncadd [#allocation4], 4294967040 }
  0x25   :  { %44 = vsyncpa [#allocation3], 1 }
  0x26   :  { %45 = vsyncpa [#allocation4], 1 }

</bundles_post_ra>
